<compile_context>
chip_gen: v7x
topology: tpu7x:2x2x1
jax: 0.10.0
libtpu: 0.0.40
codegen_flags: <defaults>
</compile_context>

<pallas_src>
import jax
import jax.numpy as jnp
from jax.experimental import pallas as pl
from jax.experimental.pallas import tpu as pltpu

BN_EPS = 1e-5  # PyTorch BatchNorm1d default eps


def _make_fe_kernel(num_layers, apply_norm_act):
    """Builds the fused FELayer kernel for a fixed stack of linear layers."""

    def kernel(alpha_ref, x_ref, *rest):
        # alpha_ref: (num_layers,) PReLU slopes in SMEM (nn.PReLU() default = scalar slope).
        # x_ref:     (b_tile, D0) batch tile in VMEM.
        # rest:      per layer (wT, b, gamma, beta, running_mean, running_var) refs,
        #            followed by the output ref.
        param_refs = rest[: 6 * num_layers]
        o_ref = rest[6 * num_layers]

        h = x_ref[...].astype(jnp.float32)                       # (b_tile, d)
        for li in range(num_layers):
            w_ref, b_ref, g_ref, bt_ref, mu_ref, var_ref = param_refs[6 * li:6 * li + 6]
            # Linear: (b_tile, d_in) @ (d_in, d_out) + bias
            h = jnp.dot(h, w_ref[...], preferred_element_type=jnp.float32)
            h = h + b_ref[...]
            if apply_norm_act[li]:
                # BatchNorm1d in inference mode (running statistics) on the VPU;
                # rsqrt goes to the EUP slot (free).
                # TODO(synk): training-mode BatchNorm (batch statistics) needs a
                # cross-tile reduction over B and is not implemented here.
                inv = jax.lax.rsqrt(var_ref[...] + BN_EPS)
                h = (h - mu_ref[...]) * (inv * g_ref[...]) + bt_ref[...]
                # PReLU, scalar slope read from SMEM (scalar path, no vector load).
                a = alpha_ref[li]
                h = jnp.where(h >= 0.0, h, a * h)
            # TODO(synk): nn.Dropout (layer_infos entries of length 3) is identity at
            # inference and is not implemented here.
        o_ref[...] = h.astype(o_ref.dtype)

    return kernel


def fe_layer_forward(x, params, alphas, apply_norm_act, *, b_tile=8):
    """Fused FELayer forward (eval mode, norm_type='batch', bias=True).

    x:      (B, D0) float32
    params: list (one per linear layer) of dicts:
              w (d_out, d_in), b (d_out,), gamma, beta, mean, var (d_out,)
    alphas: (num_layers,) float32 PReLU slopes.
    """
    B, d0 = x.shape
    num_layers = len(params)
    if B % b_tile != 0:
        b_tile = B
    grid = (B // b_tile,)

    # --- glue: pre-transpose weights, make vectors 2D for VMEM residency ---
    flat = []
    in_specs = [
        # per-layer PReLU slopes -> SMEM (whole array, no tiling)
        pl.BlockSpec(memory_space=pltpu.MemorySpace.SMEM),
        # x: tiled over batch, full feature width per block
        pl.BlockSpec((b_tile, d0), lambda i: (i, 0)),
    ]
    d_in = d0
    for p in params:
        d_out = int(p["w"].shape[0])
        flat += [
            jnp.asarray(p["w"], jnp.float32).T.reshape(d_in, d_out),
            jnp.asarray(p["b"], jnp.float32).reshape(1, d_out),
            jnp.asarray(p["gamma"], jnp.float32).reshape(1, d_out),
            jnp.asarray(p["beta"], jnp.float32).reshape(1, d_out),
            jnp.asarray(p["mean"], jnp.float32).reshape(1, d_out),
            jnp.asarray(p["var"], jnp.float32).reshape(1, d_out),
        ]
        # constant index maps -> parameters fetched once, resident across grid steps
        in_specs.append(pl.BlockSpec((d_in, d_out), lambda i: (0, 0)))
        in_specs.extend([pl.BlockSpec((1, d_out), lambda i: (0, 0))] * 5)
        d_in = d_out
    d_final = d_in

    # cost estimate: a purely streaming op with tiny FLOPs
    flops = 0
    dp = d0
    for p in params:
        flops += 2 * B * dp * int(p["w"].shape[0])
        dp = int(p["w"].shape[0])
    param_bytes = sum(int(a.size) * 4 for a in flat)
    bytes_accessed = (B * d0 + B * d_final) * 4 + param_bytes

    kernel = _make_fe_kernel(num_layers, tuple(bool(f) for f in apply_norm_act))

    fn = pl.pallas_call(
        kernel,
        out_shape=jax.ShapeDtypeStruct((B, d_final), x.dtype),
        grid=grid,
        in_specs=in_specs,
        out_specs=pl.BlockSpec((b_tile, d_final), lambda i: (i, 0)),
        compiler_params=pltpu.CompilerParams(
            dimension_semantics=("parallel",),
            vmem_limit_bytes=32 << 20,
        ),
        cost_estimate=pl.CostEstimate(
            flops=flops, transcendentals=0, bytes_accessed=bytes_accessed
        ),
    )
    return fn(jnp.asarray(alphas, jnp.float32), x, *flat)


def fe_layer_ref(x, params, alphas, apply_norm_act):
    """Pure-JAX reference (eval-mode BatchNorm, scalar PReLU)."""
    h = x
    for li, p in enumerate(params):
        h = h @ p["w"].T + p["b"]
        if apply_norm_act[li]:
            h = (h - p["mean"]) * jax.lax.rsqrt(p["var"] + BN_EPS) * p["gamma"] + p["beta"]
            h = jnp.where(h >= 0.0, h, alphas[li] * h)
    return h


if __name__ == "__main__":
    # FELayer([[32, 64], [64, 128]], last_norm=True, norm_type='batch', bias=True)
    layer_infos = [(32, 64), (64, 128)]
    B = 16
    num_layers = len(layer_infos)
    apply_norm_act = [True] * num_layers  # last_norm=True -> every layer gets BN + PReLU

    key = jax.random.PRNGKey(0)
    keys = jax.random.split(key, 1 + 6 * num_layers)
    x = jax.random.normal(keys[0], (B, layer_infos[0][0]), jnp.float32)

    params = []
    k = 1
    for d_in, d_out in layer_infos:
        bound = 1.0 / (d_in ** 0.5)  # PyTorch nn.Linear default init
        params.append(dict(
            w=jax.random.uniform(keys[k + 0], (d_out, d_in), jnp.float32, -bound, bound),
            b=jax.random.uniform(keys[k + 1], (d_out,), jnp.float32, -bound, bound),
            gamma=1.0 + 0.1 * jax.random.normal(keys[k + 2], (d_out,), jnp.float32),
            beta=0.1 * jax.random.normal(keys[k + 3], (d_out,), jnp.float32),
            mean=0.1 * jax.random.normal(keys[k + 4], (d_out,), jnp.float32),
            var=1.0 + 0.1 * jax.random.uniform(keys[k + 5], (d_out,), jnp.float32),
        ))
        k += 6
    alphas = jnp.full((num_layers,), 0.25, jnp.float32)  # nn.PReLU() default slope

    out = fe_layer_forward(x, params, alphas, apply_norm_act, b_tile=8)
    out = jax.block_until_ready(out)

    ref = fe_layer_ref(x, params, alphas, apply_norm_act)
    assert out.shape == ref.shape == (B, layer_infos[-1][1])
    max_err = float(jnp.max(jnp.abs(out - ref)))
    assert jnp.allclose(out, ref, atol=1e-2, rtol=1e-2), f"mismatch vs reference: {max_err}"
    print("KERNEL_OK")
</pallas_src>

<mosaic_0001>
module attributes {stable_mosaic.version = 11 : i64} {
  func.func @kernel(%arg0: i32, %arg1: memref<2xf32, #tpu.memory_space<smem>>, %arg2: memref<8x32xf32, #tpu.memory_space<vmem>>, %arg3: memref<32x64xf32, #tpu.memory_space<vmem>>, %arg4: memref<1x64xf32, #tpu.memory_space<vmem>>, %arg5: memref<1x64xf32, #tpu.memory_space<vmem>>, %arg6: memref<1x64xf32, #tpu.memory_space<vmem>>, %arg7: memref<1x64xf32, #tpu.memory_space<vmem>>, %arg8: memref<1x64xf32, #tpu.memory_space<vmem>>, %arg9: memref<64x128xf32, #tpu.memory_space<vmem>>, %arg10: memref<1x128xf32, #tpu.memory_space<vmem>>, %arg11: memref<1x128xf32, #tpu.memory_space<vmem>>, %arg12: memref<1x128xf32, #tpu.memory_space<vmem>>, %arg13: memref<1x128xf32, #tpu.memory_space<vmem>>, %arg14: memref<1x128xf32, #tpu.memory_space<vmem>>, %arg15: memref<8x128xf32, #tpu.memory_space<vmem>>) attributes {dimension_semantics = [#tpu.dimension_semantics<parallel>], iteration_bounds = array<i64: 2>, scalar_prefetch = 0 : i64, scratch_operands = 0 : i64, tpu.core_type = #tpu.core_type<tc>, window_params = [{transform_indices = @transform_0, window_bounds = array<i64: 2>}, {transform_indices = @transform_1, window_bounds = array<i64: 8, 32>}, {pipeline_mode = #tpu.pipeline_mode<synchronous>, transform_indices = @transform_2, window_bounds = array<i64: 32, 64>}, {pipeline_mode = #tpu.pipeline_mode<synchronous>, transform_indices = @transform_3, window_bounds = array<i64: 1, 64>}, {pipeline_mode = #tpu.pipeline_mode<synchronous>, transform_indices = @transform_4, window_bounds = array<i64: 1, 64>}, {pipeline_mode = #tpu.pipeline_mode<synchronous>, transform_indices = @transform_5, window_bounds = array<i64: 1, 64>}, {pipeline_mode = #tpu.pipeline_mode<synchronous>, transform_indices = @transform_6, window_bounds = array<i64: 1, 64>}, {pipeline_mode = #tpu.pipeline_mode<synchronous>, transform_indices = @transform_7, window_bounds = array<i64: 1, 64>}, {pipeline_mode = #tpu.pipeline_mode<synchronous>, transform_indices = @transform_8, window_bounds = array<i64: 64, 128>}, {pipeline_mode = #tpu.pipeline_mode<synchronous>, transform_indices = @transform_9, window_bounds = array<i64: 1, 128>}, {pipeline_mode = #tpu.pipeline_mode<synchronous>, transform_indices = @transform_10, window_bounds = array<i64: 1, 128>}, {pipeline_mode = #tpu.pipeline_mode<synchronous>, transform_indices = @transform_11, window_bounds = array<i64: 1, 128>}, {pipeline_mode = #tpu.pipeline_mode<synchronous>, transform_indices = @transform_12, window_bounds = array<i64: 1, 128>}, {pipeline_mode = #tpu.pipeline_mode<synchronous>, transform_indices = @transform_13, window_bounds = array<i64: 1, 128>}, {transform_indices = @transform_14, window_bounds = array<i64: 8, 128>}]} {
    %c0 = arith.constant 0 : index
    %c0_0 = arith.constant 0 : index
    %0 = vector.load %arg2[%c0, %c0_0] : memref<8x32xf32, #tpu.memory_space<vmem>>, vector<8x32xf32>
    %c0_1 = arith.constant 0 : index
    %c0_2 = arith.constant 0 : index
    %1 = vector.load %arg3[%c0_1, %c0_2] : memref<32x64xf32, #tpu.memory_space<vmem>>, vector<32x64xf32>
    %cst = arith.constant dense<0.000000e+00> : vector<8x64xf32>
    %2 = tpu.matmul %0, %1, %cst {dimension_numbers = #tpu.dot_dimension_numbers<[1], [0], [0], [1], [0, 0, 1, 1], [], []>} : vector<8x32xf32>, vector<32x64xf32>, vector<8x64xf32> -> vector<8x64xf32>
    %c0_3 = arith.constant 0 : index
    %c0_4 = arith.constant 0 : index
    %3 = vector.load %arg4[%c0_3, %c0_4] : memref<1x64xf32, #tpu.memory_space<vmem>>, vector<1x64xf32>
    %4 = vector.broadcast %3 : vector<1x64xf32> to vector<8x64xf32>
    %5 = arith.addf %2, %4 : vector<8x64xf32>
    %c0_5 = arith.constant 0 : index
    %c0_6 = arith.constant 0 : index
    %6 = vector.load %arg8[%c0_5, %c0_6] : memref<1x64xf32, #tpu.memory_space<vmem>>, vector<1x64xf32>
    %cst_7 = arith.constant 9.99999974E-6 : f32
    %7 = vector.broadcast %cst_7 : f32 to vector<1x64xf32>
    %8 = arith.addf %6, %7 : vector<1x64xf32>
    %9 = math.rsqrt %8 : vector<1x64xf32>
    %c0_8 = arith.constant 0 : index
    %c0_9 = arith.constant 0 : index
    %10 = vector.load %arg7[%c0_8, %c0_9] : memref<1x64xf32, #tpu.memory_space<vmem>>, vector<1x64xf32>
    %11 = vector.broadcast %10 : vector<1x64xf32> to vector<8x64xf32>
    %12 = arith.subf %5, %11 : vector<8x64xf32>
    %c0_10 = arith.constant 0 : index
    %c0_11 = arith.constant 0 : index
    %13 = vector.load %arg5[%c0_10, %c0_11] : memref<1x64xf32, #tpu.memory_space<vmem>>, vector<1x64xf32>
    %14 = arith.mulf %9, %13 : vector<1x64xf32>
    %15 = vector.broadcast %14 : vector<1x64xf32> to vector<8x64xf32>
    %16 = arith.mulf %12, %15 : vector<8x64xf32>
    %c0_12 = arith.constant 0 : index
    %c0_13 = arith.constant 0 : index
    %17 = vector.load %arg6[%c0_12, %c0_13] : memref<1x64xf32, #tpu.memory_space<vmem>>, vector<1x64xf32>
    %18 = vector.broadcast %17 : vector<1x64xf32> to vector<8x64xf32>
    %19 = arith.addf %16, %18 : vector<8x64xf32>
    %c0_14 = arith.constant 0 : index
    %20 = memref.load %arg1[%c0_14] : memref<2xf32, #tpu.memory_space<smem>>
    %cst_15 = arith.constant 0.000000e+00 : f32
    %21 = vector.broadcast %cst_15 : f32 to vector<8x64xf32>
    %22 = arith.cmpf oge, %19, %21 : vector<8x64xf32>
    %23 = vector.broadcast %20 : f32 to vector<8x64xf32>
    %24 = arith.mulf %23, %19 : vector<8x64xf32>
    %25 = arith.select %22, %19, %24 : vector<8x64xi1>, vector<8x64xf32>
    %c0_16 = arith.constant 0 : index
    %c0_17 = arith.constant 0 : index
    %26 = vector.load %arg9[%c0_16, %c0_17] : memref<64x128xf32, #tpu.memory_space<vmem>>, vector<64x128xf32>
    %cst_18 = arith.constant dense<0.000000e+00> : vector<8x128xf32>
    %27 = tpu.matmul %25, %26, %cst_18 {dimension_numbers = #tpu.dot_dimension_numbers<[1], [0], [0], [1], [0, 0, 1, 1], [], []>} : vector<8x64xf32>, vector<64x128xf32>, vector<8x128xf32> -> vector<8x128xf32>
    %c0_19 = arith.constant 0 : index
    %c0_20 = arith.constant 0 : index
    %28 = vector.load %arg10[%c0_19, %c0_20] : memref<1x128xf32, #tpu.memory_space<vmem>>, vector<1x128xf32>
    %29 = vector.broadcast %28 : vector<1x128xf32> to vector<8x128xf32>
    %30 = arith.addf %27, %29 : vector<8x128xf32>
    %c0_21 = arith.constant 0 : index
    %c0_22 = arith.constant 0 : index
    %31 = vector.load %arg14[%c0_21, %c0_22] : memref<1x128xf32, #tpu.memory_space<vmem>>, vector<1x128xf32>
    %cst_23 = arith.constant 9.99999974E-6 : f32
    %32 = vector.broadcast %cst_23 : f32 to vector<1x128xf32>
    %33 = arith.addf %31, %32 : vector<1x128xf32>
    %34 = math.rsqrt %33 : vector<1x128xf32>
    %c0_24 = arith.constant 0 : index
    %c0_25 = arith.constant 0 : index
    %35 = vector.load %arg13[%c0_24, %c0_25] : memref<1x128xf32, #tpu.memory_space<vmem>>, vector<1x128xf32>
    %36 = vector.broadcast %35 : vector<1x128xf32> to vector<8x128xf32>
    %37 = arith.subf %30, %36 : vector<8x128xf32>
    %c0_26 = arith.constant 0 : index
    %c0_27 = arith.constant 0 : index
    %38 = vector.load %arg11[%c0_26, %c0_27] : memref<1x128xf32, #tpu.memory_space<vmem>>, vector<1x128xf32>
    %39 = arith.mulf %34, %38 : vector<1x128xf32>
    %40 = vector.broadcast %39 : vector<1x128xf32> to vector<8x128xf32>
    %41 = arith.mulf %37, %40 : vector<8x128xf32>
    %c0_28 = arith.constant 0 : index
    %c0_29 = arith.constant 0 : index
    %42 = vector.load %arg12[%c0_28, %c0_29] : memref<1x128xf32, #tpu.memory_space<vmem>>, vector<1x128xf32>
    %43 = vector.broadcast %42 : vector<1x128xf32> to vector<8x128xf32>
    %44 = arith.addf %41, %43 : vector<8x128xf32>
    %c1 = arith.constant 1 : index
    %45 = memref.load %arg1[%c1] : memref<2xf32, #tpu.memory_space<smem>>
    %cst_30 = arith.constant 0.000000e+00 : f32
    %46 = vector.broadcast %cst_30 : f32 to vector<8x128xf32>
    %47 = arith.cmpf oge, %44, %46 : vector<8x128xf32>
    %48 = vector.broadcast %45 : f32 to vector<8x128xf32>
    %49 = arith.mulf %48, %44 : vector<8x128xf32>
    %50 = arith.select %47, %44, %49 : vector<8x128xi1>, vector<8x128xf32>
    %c0_31 = arith.constant 0 : index
    %c0_32 = arith.constant 0 : index
    %51 = vector.load %arg15[%c0_31, %c0_32] : memref<8x128xf32, #tpu.memory_space<vmem>>, vector<8x128xf32>
    tpu.vector_store %arg15[%c0_31, %c0_32], %50 {strides = array<i32>} : memref<8x128xf32, #tpu.memory_space<vmem>>, vector<8x128xf32>,
    return
  }
  func.func @transform_0(%arg0: i32) -> i32 {
    %c0_i32 = arith.constant 0 : i32
    %c0_i32_0 = arith.constant 0 : i32
    return %c0_i32 : i32
  }
  func.func @transform_1(%arg0: i32) -> (i32, i32) {
    %c0_i32 = arith.constant 0 : i32
    %c0_i32_0 = arith.constant 0 : i32
    return %arg0, %c0_i32 : i32, i32
  }
  func.func @transform_2(%arg0: i32) -> (i32, i32) {
    %c0_i32 = arith.constant 0 : i32
    %c0_i32_0 = arith.constant 0 : i32
    %c0_i32_1 = arith.constant 0 : i32
    return %c0_i32, %c0_i32_0 : i32, i32
  }
  func.func @transform_3(%arg0: i32) -> (i32, i32) {
    %c0_i32 = arith.constant 0 : i32
    %c0_i32_0 = arith.constant 0 : i32
    %c0_i32_1 = arith.constant 0 : i32
    return %c0_i32, %c0_i32_0 : i32, i32
  }
  func.func @transform_4(%arg0: i32) -> (i32, i32) {
    %c0_i32 = arith.constant 0 : i32
    %c0_i32_0 = arith.constant 0 : i32
    %c0_i32_1 = arith.constant 0 : i32
    return %c0_i32, %c0_i32_0 : i32, i32
  }
  func.func @transform_5(%arg0: i32) -> (i32, i32) {
    %c0_i32 = arith.constant 0 : i32
    %c0_i32_0 = arith.constant 0 : i32
    %c0_i32_1 = arith.constant 0 : i32
    return %c0_i32, %c0_i32_0 : i32, i32
  }
  func.func @transform_6(%arg0: i32) -> (i32, i32) {
    %c0_i32 = arith.constant 0 : i32
    %c0_i32_0 = arith.constant 0 : i32
    %c0_i32_1 = arith.constant 0 : i32
    return %c0_i32, %c0_i32_0 : i32, i32
  }
  func.func @transform_7(%arg0: i32) -> (i32, i32) {
    %c0_i32 = arith.constant 0 : i32
    %c0_i32_0 = arith.constant 0 : i32
    %c0_i32_1 = arith.constant 0 : i32
    return %c0_i32, %c0_i32_0 : i32, i32
  }
  func.func @transform_8(%arg0: i32) -> (i32, i32) {
    %c0_i32 = arith.constant 0 : i32
    %c0_i32_0 = arith.constant 0 : i32
    %c0_i32_1 = arith.constant 0 : i32
    return %c0_i32, %c0_i32_0 : i32, i32
  }
  func.func @transform_9(%arg0: i32) -> (i32, i32) {
    %c0_i32 = arith.constant 0 : i32
    %c0_i32_0 = arith.constant 0 : i32
    %c0_i32_1 = arith.constant 0 : i32
    return %c0_i32, %c0_i32_0 : i32, i32
  }
  func.func @transform_10(%arg0: i32) -> (i32, i32) {
    %c0_i32 = arith.constant 0 : i32
    %c0_i32_0 = arith.constant 0 : i32
    %c0_i32_1 = arith.constant 0 : i32
    return %c0_i32, %c0_i32_0 : i32, i32
  }
  func.func @transform_11(%arg0: i32) -> (i32, i32) {
    %c0_i32 = arith.constant 0 : i32
    %c0_i32_0 = arith.constant 0 : i32
    %c0_i32_1 = arith.constant 0 : i32
    return %c0_i32, %c0_i32_0 : i32, i32
  }
  func.func @transform_12(%arg0: i32) -> (i32, i32) {
    %c0_i32 = arith.constant 0 : i32
    %c0_i32_0 = arith.constant 0 : i32
    %c0_i32_1 = arith.constant 0 : i32
    return %c0_i32, %c0_i32_0 : i32, i32
  }
  func.func @transform_13(%arg0: i32) -> (i32, i32) {
    %c0_i32 = arith.constant 0 : i32
    %c0_i32_0 = arith.constant 0 : i32
    %c0_i32_1 = arith.constant 0 : i32
    return %c0_i32, %c0_i32_0 : i32, i32
  }
  func.func @transform_14(%arg0: i32) -> (i32, i32) {
    %c0_i32 = arith.constant 0 : i32
    %c0_i32_0 = arith.constant 0 : i32
    return %arg0, %c0_i32 : i32, i32
  }
}

</mosaic_0001>

<bundles_post_ra>
// kernel: tpu_custom_call.1
= control target key start
LH: loop header
LB: loop body
LE: loop exit
PB: predicated region body
PF: predicated region fallthrough
CT: control target
= control target key end

     0   :  { %s1605_s0 = inlined_call_operand.hbm [shape: f32[2], index: 0, kind: input, shape index: {}]   ;;  %s1606_s1 = inlined_call_operand.hbm [shape: f32[16,32], index: 1, kind: input, shape index: {}]   ;;  %s1607_s2 = inlined_call_operand.hbm [shape: f32[32,64], index: 2, kind: input, shape index: {}]   ;;  %s1608_s3 = inlined_call_operand.vmem [shape: f32[1,64], index: 3, kind: input, shape index: {}]   ;;  %s1609_s4 = inlined_call_operand.vmem [shape: f32[1,64], index: 4, kind: input, shape index: {}]   ;;  %s1610_s5 = inlined_call_operand.vmem [shape: f32[1,64], index: 5, kind: input, shape index: {}]   ;;  %s1611_s6 = inlined_call_operand.vmem [shape: f32[1,64], index: 6, kind: input, shape index: {}]   ;;  %s1612_s7 = inlined_call_operand.vmem [shape: f32[1,64], index: 7, kind: input, shape index: {}]   ;;  %s1613_s8 = inlined_call_operand.hbm [shape: f32[64,128], index: 8, kind: input, shape index: {}]   ;;  %s1614_s9 = inlined_call_operand.vmem [shape: f32[1,128], index: 9, kind: input, shape index: {}]   ;;  %s1615_s10 = inlined_call_operand.vmem [shape: f32[1,128], index: 10, kind: input, shape index: {}]   ;;  %s1616_s11 = inlined_call_operand.vmem [shape: f32[1,128], index: 11, kind: input, shape index: {}]   ;;  %s1617_s12 = inlined_call_operand.vmem [shape: f32[1,128], index: 12, kind: input, shape index: {}]   ;;  %s1618_s13 = inlined_call_operand.vmem [shape: f32[1,128], index: 13, kind: input, shape index: {}]   ;;  %s1619_s14 = inlined_call_operand.hbm [shape: f32[16,128], index: 14, kind: output, shape index: {}]  }
   0x1   :  { %1626 = sst [smem:[#allocation17_spill]] %s1614_s9 }
   0x2   :  { %1627 = sst [smem:[#allocation18_spill]] %s1615_s10 }
   0x3   :  { %1628 = sst [smem:[#allocation19_spill]] %s1616_s11 }
   0x4   :  { %1629 = sst [smem:[#allocation20_spill]] %s1617_s12 }
   0x5   :  { %1630 = sst [smem:[#allocation21_spill]] %s1618_s13 }
   0x6   :  { %1631 = sst [smem:[#allocation22_spill]] %s1619_s14 }
   0x7   :  { %19 = vsyncpa [#allocation5], 0 }
   0x8   :  { %20 = vsyncpa [#allocation3], 0 }
   0x9   :  { %22 = vsyncpa [#allocation3 + $0x1], 0 }
   0xa   :  { %23 = vsyncpa [#allocation8], 0 }
   0xb   :  { %24 = vsyncpa [#allocation4], 0 }
   0xc   :  { %26 = vsyncpa [#allocation4 + $0x1], 0  ;;  %s1316_s29 = smov 0   ;;  %s1318_s30 = smov 0  }
   0xd   :  { %s1320_s15 = smov 0   ;;  %s1322_s16 = smov 0  }
   0xe LB: > { %1632 = sst [smem:[#allocation15_spill]] %s1217_s29  ;;  %s1337_s17 = sadd.s32 4294967295, %s1229_s16   ;;  %s1229_s16 = sphi %s1322_s16, %s1662_s16   ;;  %s1225_s15 = sphi %s1320_s15, %s1661_s15   ;;  %s1221_s30 = sphi %s1318_s30, %s1660_s30   ;;  %s1217_s29 = sphi %s1316_s29, %s1659_s29  }
   0xf   : > { %s881_s18 = sadd.s32 4294967294, %s1229_s16   ;;  %p73_p0 = scmp.ne.s32.totalorder %s1221_s30, %s1217_s29 }
  0x10   : > { %p1623_p1 = scmp.eq.s32.totalorder %s1337_s17, 0  ;;  %p355_p3 = scmp.eq.s32.totalorder %s881_s18, 1 }
  0x11   : > { %p882_p5 = scmp.ge.s32.totalorder %s1229_s16, 1  ;;  %p362_p7 = scmp.lt.s32.totalorder %s1229_s16, 3 }
  0x12   : > { %p1346_p4 = por %p1623_p1, %p73_p0  ;;  %p1351_p6 = por %p355_p3, %p73_p0 }
  0x13   : > { %p1356_p8 = pnand %p882_p5, %p362_p7  ;;  %s1231_s22 = smov [#allocation7]  }
  0x14   : > { %s1633_s19 = scalar_select %p1346_p4, 1, 0 }
  0x15   : > { %s1634_s20 = scalar_select %p1351_p6, 1, 0 }
  0x16   : > { %s383_s23 = sshll.u32 %s1231_s22, 4  ;;  %p986_p9 = pneg %p1356_p8  ;;  %s1360_s23 = int_to_ptr.vmem [resolvable:$true] %s383_s23 }
  0x17   : > { %1635 = sst [smem:[#allocation16_spill]] %s1634_s20  ;;  %s1232_s25 = smov [#allocation9]  }
  0x18   : > { %p1367_p11 = pnand %p986_p9, %p1623_p1  ;;  %s411_s26 = sshll.u32 %s1232_s25, 4  ;;  %s1371_s26 = int_to_ptr.vmem [resolvable:$true] %s411_s26 }
  0x19   : > { %s1056_s18 = scalar_lea.hbm %s1607_s2, 512 }
  0x1a   : > { %p1057_p12 = scmp.ne.s32.totalorder %s1607_s2, %s1056_s18  ;;  %p1381_p13 = pneg %p1367_p11 }
  0x1b   : > { %p1063_p5 = scmp.lt.u32.totalorder %s1056_s18, %s1607_s2 }
  0x1c   : > { %p1059_p0 = pnand %p1381_p13, %p1057_p12 }
  0x1e   : > { %p1060_p3 = pneg %p1059_p0 }
  0x20   : > { %p1065_p7 = pnand %p1063_p5, %p1060_p3 }
  0x22   : > { %1068 = shalt.err (!%p1065_p7)
}
  0x23   : > { %s1069_s20 = scalar_lea.vmem %s1360_s23, 512  ;;  %p1077_p2 = scmp.lt.s32.totalorder %s1360_s23, %s1360_s23 }
  0x24   : > { %p1070_p9 = scmp.ne.s32.totalorder %s1360_s23, %s1069_s20  ;;  %p1078_p6 = scmp.lt.s32.totalorder %s1069_s20, %s1069_s20 }
  0x26   : > { %p1072_p10 = pnand %p1070_p9, %p1381_p13  ;;  %p1079_p12 = por %p1078_p6, %p1077_p2 }
  0x28   : > { %p1073_p1 = pneg %p1072_p10 }
  0x2a   : > { %p1080_p0 = pnand %p1079_p12, %p1073_p1 }
  0x2c   : > { %1083 = shalt.err (!%p1080_p0)
}
  0x2d   : > { %s1233_s27 = smov 128   ;;  %s1234_s14 = smov 8  }
  0x2e   : > { %992 = dma.hbm_to_vmem [thread:$0]  (!%p1367_p11), %s1607_s2, 512, %s1360_s23, [#allocation8], %s1233_s27, %s1233_s27, %s1234_s14  }
  0x2f   : > { %s1084_s20 = scalar_lea.hbm %s1605_s0, 16 }
  0x30   : > { %p1085_p1 = scmp.ne.s32.totalorder %s1605_s0, %s1084_s20  ;;  %p1091_p10 = scmp.lt.u32.totalorder %s1084_s20, %s1605_s0 }
  0x32   : > { %p1087_p2 = pnand %p1085_p1, %p1381_p13 }
  0x34   : > { %p1088_p6 = pneg %p1087_p2 }
  0x36   : > { %p1093_p3 = pnand %p1091_p10, %p1088_p6 }
  0x38   : > { %1096 = shalt.err (!%p1093_p3)
}
  0x39   : > { %s1235_s13 = smov [#allocation2]   ;;  %s1097_s12 = scalar_lea.hbm %s1613_s8, 1024 }
  0x3a   : > { %989 = dma.hbm_to_smem (!%p1367_p11), %s1605_s0, 16, %s1235_s13, [#allocation5]  }
  0x3b   : > { %p1098_p5 = scmp.ne.s32.totalorder %s1613_s8, %s1097_s12  ;;  %p1104_p12 = scmp.lt.u32.totalorder %s1097_s12, %s1613_s8 }
  0x3d   : > { %p1100_p7 = pnand %p1098_p5, %p1381_p13 }
  0x3f   : > { %p1101_p9 = pneg %p1100_p7 }
  0x41   : > { %p1106_p0 = pnand %p1104_p12, %p1101_p9 }
  0x43   : > { %1109 = shalt.err (!%p1106_p0)
}
  0x44   : > { %s1110_s13 = scalar_lea.vmem %s1371_s26, 1024  ;;  %p1118_p10 = scmp.lt.s32.totalorder %s1371_s26, %s1371_s26 }
  0x45   : > { %p1111_p1 = scmp.ne.s32.totalorder %s1371_s26, %s1110_s13  ;;  %p1119_p3 = scmp.lt.s32.totalorder %s1110_s13, %s1110_s13 }
  0x47   : > { %p1113_p2 = pnand %p1111_p1, %p1381_p13  ;;  %p1120_p5 = por %p1119_p3, %p1118_p10 }
  0x49   : > { %p1114_p6 = pneg %p1113_p2 }
  0x4b   : > { %p1121_p7 = pnand %p1120_p5, %p1114_p6 }
  0x4d   : > { %1124 = shalt.err (!%p1121_p7)
}
  0x4e   : > { %995 = dma.hbm_to_vmem [thread:$0]  (!%p1367_p11), %s1613_s8, 1024, %s1371_s26, [#allocation8], %s1233_s27, %s1233_s27, %s1234_s14  }
  0x4f   : > { %s1448_s29 = sadd.s32 1, %s1229_s16   ;;  %s60_s28 = sadd.s32 1, %s1225_s15 }
  0x50   : > { %s57_s24 = ssub.s32 %s1229_s16, %s1448_s29  ;;  %p67_p9 = scmp.ne.s32.totalorder %s1225_s15, %s1221_s30 }
  0x51   : > { %p58_p13 = scmp.eq.s32.totalorder %s57_s24, 0  ;;  %p68_p12 = scmp.eq.s32.totalorder %s1229_s16, 0 }
  0x52   : > { %p1007_p0 = scmp.lt.s32.totalorder %s1229_s16, 2  ;;  %p1639_p2 = scmp.eq.s32.totalorder %s1337_s17, 1 }
  0x53   : > { %s1458_s18 = scalar_select %p58_p13, %s1225_s15, %s60_s28  }
  0x54   : > { %p69_p1 = por %p68_p12, %p67_p9  ;;  %p1462_p6 = por %p1639_p2, %p67_p9 }
  0x55   : > { %s440_s12 = sand.u32 1, %s1225_s15   ;;  %s888_s22 = sshll.u32 %s1229_s16, 7 }
  0x56   : > { %s1640_s11 = scalar_select %p1462_p6, 1, 0 }
  0x57   : > { %s887_s26 = sshll.u32 %s440_s12, 3  ;;  %s1471_s25 = scalar_lea.hbm %s1606_s1, %s888_s22 }
  0x58   : > { %s444_s9 = scalar_lea.vmem [#allocation6], %s887_s26  ;;  %p1473_p11 = pnand %p1007_p0, %p69_p1 }
  0x59   : > { %s451_s10 = sshll.u32 %s444_s9, 4  ;;  %s441_s20 = scalar_lea.sflag [#allocation3], %s440_s12  ;;  %s1477_s10 = int_to_ptr.vmem [resolvable:$true] %s451_s10 }
  0x5a   : > { %s1125_s23 = scalar_lea.hbm %s1471_s25, 128  ;;  %p1127_p3 = pneg %p1473_p11 }
  0x5b   : > { %p1126_p10 = scmp.ne.s32.totalorder %s1471_s25, %s1125_s23  ;;  %s1130_s22 = scalar_lea.hbm %s1606_s1, 256 }
  0x5c   : > { %p1131_p13 = scmp.lt.u32.totalorder %s1471_s25, %s1606_s1  ;;  %p1132_p9 = scmp.lt.u32.totalorder %s1130_s22, %s1125_s23 }
  0x5d   : > { %p1128_p5 = pnand %p1127_p3, %p1126_p10  ;;  %p1134_p0 = scmp.lt.u32.totalorder %s1125_s23, %s1471_s25 }
  0x5e   : > { %p1133_p12 = por %p1132_p9, %p1131_p13 }
  0x5f   : > { %p1129_p7 = pneg %p1128_p5 }
  0x60   : > { %p1135_p1 = por %p1134_p0, %p1133_p12 }
  0x62   : > { %p1136_p2 = pnand %p1135_p1, %p1129_p7 }
  0x64   : > { %1139 = shalt.err (!%p1136_p2)
}
  0x65   : > { %s1140_s12 = scalar_lea.vmem %s1477_s10, 128  ;;  %s1236_s14 = smov [#allocation6]  }
  0x66   : > { %p1141_p10 = scmp.ne.s32.totalorder %s1477_s10, %s1140_s12  ;;  %s1145_s9 = sshll.u32 %s1236_s14, 4  ;;  %s1146_s9 = int_to_ptr.vmem [resolvable:$false] %s1145_s9 }
  0x67   : > { %s1147_s24 = scalar_lea.vmem %s1146_s9, 256  ;;  %p1148_p4 = scmp.lt.s32.totalorder %s1477_s10, %s1146_s9 }
  0x68   : > { %p1143_p5 = pnand %p1141_p10, %p1127_p3  ;;  %p1149_p13 = scmp.lt.s32.totalorder %s1147_s24, %s1140_s12 }
  0x6a   : > { %p1144_p6 = pneg %p1143_p5  ;;  %p1150_p9 = por %p1149_p13, %p1148_p4 }
  0x6c   : > { %p1151_p12 = pnand %p1150_p9, %p1144_p6 }
  0x6e   : > { %1154 = shalt.err (!%p1151_p12)
}
  0x6f   : > { %999 = dma.hbm_to_vmem [thread:$0]  (!%p1473_p11), %s1471_s25, 128, %s1477_s10, %s441_s20  }
  0x70   : > { %460 = sbr.rel (%p1356_p8) target bundleno = 599 (0x257), region = 76  ;;  %p1642_p3 = scmp.eq.s32.totalorder (!%p1356_p8), %s1337_s17, 0 }
  0x77   : > { %1200 = dma.done.wait (%p1642_p3), [#allocation5], 16   ;;  %p1643_p7 = pmov %p1642_p3 }
  0x78   : > { %s1511_s23 = sand.u32 1, %s1221_s30   ;;  %p1644_p4 = scmp.ne.s32.totalorder %s1633_s19, 0 }
  0x79   : > { %1202 = vsyncadd (%p1643_p7), [#allocation5], 4294967280  ;;  %s891_s13 = sshll.u32 %s1511_s23, 3  ;;  %s467_s28 = scalar_lea.sflag [#allocation3], %s1511_s23 }
  0x7a   : > { %s470_s25 = scalar_lea.vmem [#allocation6], %s891_s13 }
  0x7b   : > { %1204 = dma.done.wait (%p1644_p4), %s467_s28, 128  }
  0x7c   : > { %1206 = vsyncadd (%p1644_p4), %s467_s28, 4294967168  ;;  %p1645_p8 = pmov %p1642_p3 }
  0x7d   : > { %p1646_p6 = pmov %p1642_p3 }
  0x7e   : > { %1208 = dma.done.wait (%p1645_p8), [#allocation8], 1536  }
  0x7f   : > { %1210 = vsyncadd (%p1646_p6), [#allocation8], 4294965760 }
  0x80   : > { %483 = sfence }
  0x81   : > { %v525_v0 = vld [vmem:[#allocation7] sm:$0xff]  ;;  %v526_v1 = vld [vmem:[#allocation7 + $0x8] sm:$0xff]  ;;  %v527_v2 = vld [vmem:[#allocation7 + $0x10] sm:$0xff]  ;;  %v1237_v3 = vmov 0.0|0.0   ;;  %vm1238_vm0 = vmmov 0   ;;  %v1239_v6 = vmov 0.0   ;;  %v624_v23 = vlaneseq }
  0x82   : > { %952 = vmatprep.subr.bf16.mxu0 %v1237_v3  ;;  %v953_v4 = vpack.c.bf16 %v526_v1, %v525_v0  ;;  %v528_v5 = vld [vmem:[#allocation7 + $0x18] sm:$0xff]  ;;  %930 = vmatprep.mubr.msk.f32.mxu0 %vm1238_vm0, %v1239_v6  ;;  %v643_v7 = vld [vmem:[#allocation9] sm:$0xff]  ;;  %v644_v8 = vld [vmem:[#allocation9 + $0x8] sm:$0xff]  ;;  %vm536_vm1 = vcmask 261120   ;;  %s638_s27 = sld [smem:[#allocation2]]  ;;  %vm658_vm3 = vcmask 523264  }
  0x83   : > { %958 = vmatprep.subr.bf16.mxu1 %v1237_v3  ;;  %949 = vmatprep.mubr.msk.f32.mxu1 %vm1238_vm0, %v1239_v6  ;;  %v956_v9 = vpack.c.bf16 %v528_v5, %v527_v2  ;;  %v959_v10 = vpack.c.bf16 %v644_v8, %v643_v7  ;;  %v524_v11 = vld [vmem:[%s470_s25] sm:$0xff]  ;;  %v647_v15 = vld [vmem:[#allocation9 + $0x20] sm:$0xff]  ;;  %v648_v16 = vld [vmem:[#allocation9 + $0x28] sm:$0xff]  ;;  %v625_v24 = vshrl.u32 %v624_v23, 7  ;;  %s1647_s19 = sld [smem:[#allocation21_spill]]  ;;  %s1648_s20 = sld [smem:[#allocation18_spill]] }
  0x84   : > { %954 = vmatpush3.bf16.msra.mxu0 %v953_v4  ;;  %v645_v12 = vld [vmem:[#allocation9 + $0x10] sm:$0xff]  ;;  %v646_v13 = vld [vmem:[#allocation9 + $0x18] sm:$0xff]  ;;  %v965_v17 = vpack.c.bf16 %v648_v16, %v647_v15  ;;  %s903_s12 = sld [smem:[#allocation2 + $0x1]]  ;;  %s1650_s24 = sld [smem:[#allocation20_spill]] }
  0x85   : > { %955 = vmatprep.subr.bf16.mxu0 %v1237_v3  ;;  %960 = vmatpush3.bf16.msra.mxu1 %v959_v10  ;;  %v962_v14 = vpack.c.bf16 %v646_v13, %v645_v12  ;;  %v649_v18 = vld [vmem:[#allocation9 + $0x30] sm:$0xff]  ;;  %v650_v19 = vld [vmem:[#allocation9 + $0x38] sm:$0xff]  ;;  %v626_v28 = vsub.s32 0, %v625_v24  ;;  %s905_s21 = sshll.u32 %s1337_s17, 7  ;;  %s523_s10 = scalar_lea.vmem [#allocation10], %s891_s13 }
  0x86   : > { %961 = vmatprep.subr.bf16.mxu1 %v1237_v3  ;;  %v968_v20 = vpack.c.bf16 %v650_v19, %v649_v18  ;;  %v610_v21 = vld [vmem:[%s1612_s7] sm:$0x1]  ;;  %p1653_p0 = scmp.ne.s32.totalorder %s1640_s11, 0  ;;  %s1240_s17 = smov [#allocation10]  }
  0x87   : > { %v611_v22 = vadd.f32 1e-05, %v610_v21  ;;  %v621_v26 = vld [vmem:[%s1609_s4] sm:$0x1]  ;;  %s1159_s13 = sshll.u32 %s1240_s17, 4  ;;  %s1160_s13 = int_to_ptr.vmem [resolvable:$false] %s1159_s13 }
  0x88   : > { %957 = vmatpush3.bf16.msra.mxu0 %v956_v9  ;;  %v895_v29 = vld [vmem:[%s1608_s3] ss:$0 sm:$0xff]  ;;  %v640_v38 = vstv %s638_s27  ;;  %s1649_s27 = sld [smem:[#allocation17_spill]] }
  0x89   : > { %963 = vmatpush3.bf16.msra.mxu1 %v962_v14  ;;  %1052 = vrsqrt.f32 %v611_v22  ;;  %v897_v31 = vld [vmem:[%s1611_s6] ss:$0 sm:$0xff] }
  0x8a   : > { %964 = vmatprep.subr.bf16.mxu1 %v1237_v3  ;;  %v898_v36 = vld [vmem:[%s1610_s5] ss:$0 sm:$0xff]  ;;  %v762_v56 = vstv %s903_s12  ;;  %s767_s12 = scalar_lea.sflag [#allocation4], %s1511_s23 }
  0x8b   : > { %931 = vmatmul.mubr.msk.f32.vlgmr.msra.gmra.mrb[0].mxu0 %vm536_vm1, %v524_v11  ;;  %v732_v42 = vld [vmem:[%s1647_s19] sm:$0x1]  ;;  %s1651_s19 = sld [smem:[#allocation19_spill]] }
  0x8c   : > { %v733_v43 = vadd.f32 1e-05, %v732_v42  ;;  %v743_v45 = vld [vmem:[%s1648_s20] sm:$0x1]  ;;  %s780_s20 = sshll.u32 %s523_s10, 4  ;;  %s1563_s20 = int_to_ptr.vmem [resolvable:$true] %s780_s20 }
  0x8d   : > { %966 = vmatpush3.bf16.msra.mxu1 %v965_v17  ;;  %v901_v49 = vld [vmem:[%s1650_s24] ss:$0 sm:$0xff]  ;;  %s1155_s9 = scalar_lea.vmem %s1563_s20, 128  ;;  %s1161_s24 = scalar_lea.vmem %s1160_s13, 256 }
  0x8e   : > { %967 = vmatprep.subr.bf16.mxu1 %v1237_v3  ;;  %1054 = vrsqrt.f32 %v733_v43  ;;  %v899_v47 = vld [vmem:[%s1649_s27] ss:$0 sm:$0xff]  ;;  %s1652_s27 = sld [smem:[#allocation22_spill]]  ;;  %p1156_p11 = scmp.ne.s32.totalorder %s1563_s20, %s1155_s9 }
  0x8f   : > { %p1162_p10 = scmp.lt.s32.totalorder %s1563_s20, %s1160_s13  ;;  %p1163_p5 = scmp.lt.s32.totalorder %s1161_s24, %s1155_s9 }
  0x90   : > { %p1157_p1 = pnand %p1156_p11, %p1653_p0 }
  0x91   : > { %969 = vmatpush3.bf16.msra.mxu1 %v968_v20  ;;  %v902_v54 = vld [vmem:[%s1651_s19] ss:$0 sm:$0xff]  ;;  %p1164_p13 = por %p1163_p5, %p1162_p10 }
  0x92   : > { %p1158_p2 = pneg %p1157_p1 }
  0x93   : > { %v1053_v25 = vpop.eup %1052 }
  0x94   : > { %v622_v27 = vmul.f32 %v1053_v25, %v621_v26  ;;  %s1561_s14 = scalar_lea.hbm %s1652_s27, %s905_s21  ;;  %p1165_p9 = pnand %p1164_p13, %p1158_p2 }
  0x96   : > { %v627_v33 = vrot.slane %v622_v27, %v626_v28 }
  0x98   : > { %v1055_v44 = vpop.eup %1054 }
  0x99   : > { %v744_v46 = vmul.f32 %v1055_v44, %v743_v45 }
  0x9b   : > { %v749_v51 = vrot.slane %v744_v46, %v626_v28 }
 0x15e   : > { %v606_v30 = vpop.f32.mrb[0].mxu0 }
 0x15f   : > { %v607_v32 = vadd.f32 %v895_v29, %v606_v30  ;;  %v932_v34 = vpop.f32.mrb[1].mxu0 }
 0x161   : > { %v620_v35 = vsub.f32 %v607_v32, %v897_v31 }
 0x163   : > { %v629_v37 = vmul.f32 %v627_v33, %v620_v35 }
 0x165   : > { %v637_v39 = vadd.f32 %v898_v36, %v629_v37 }
 0x167   : > { %vm639_vm2 = vcmp.ge.f32.partialorder %v637_v39, 0.0  ;;  %v641_v40 = vmul.f32 %v640_v38, %v637_v39 }
 0x169   : > { %v642_v41 = vsel %vm639_vm2, %v637_v39, %v641_v40 }
 0x16a   : > { %950 = vmatmul.mubr.msk.f32.vlgmr.msra.gmra.mrb[0].mxu1 %vm658_vm3, %v642_v41 }
 0x23d   : > { %v728_v48 = vpop.f32.mrb[0].mxu1 }
 0x23e   : > { %v729_v50 = vadd.f32 %v899_v47, %v728_v48  ;;  %v951_v52 = vpop.f32.mrb[1].mxu1 }
 0x240   : > { %v742_v53 = vsub.f32 %v729_v50, %v901_v49 }
 0x242   : > { %v751_v55 = vmul.f32 %v749_v51, %v742_v53 }
 0x244   : > { %v759_v57 = vadd.f32 %v902_v54, %v751_v55 }
 0x246   : > { %vm761_vm4 = vcmp.ge.f32.partialorder %v759_v57, 0.0  ;;  %v763_v58 = vmul.f32 %v762_v56, %v759_v57 }
 0x248   : > { %v764_v59 = vsel %vm761_vm4, %v759_v57, %v763_v58 }
 0x249   : > { %765 = vst [vmem:[%s523_s10] sm:$0xff] %v764_v59 }
 0x24a   : > { %1168 = shalt.err (!%p1165_p9)
}
 0x24b   : > { %s1169_s23 = scalar_lea.hbm %s1561_s14, 128  ;;  %s1173_s19 = scalar_lea.hbm %s1652_s27, 256 }
 0x24c   : > { %p1170_p12 = scmp.ne.s32.totalorder %s1561_s14, %s1169_s23  ;;  %p1174_p4 = scmp.lt.u32.totalorder %s1561_s14, %s1652_s27 }
 0x24d   : > { %p1175_p8 = scmp.lt.u32.totalorder %s1173_s19, %s1169_s23  ;;  %p1177_p11 = scmp.lt.u32.totalorder %s1169_s23, %s1561_s14 }
 0x24e   : > { %p1171_p3 = pnand %p1170_p12, %p1653_p0 }
 0x24f   : > { %p1176_p6 = por %p1175_p8, %p1174_p4 }
 0x250   : > { %p1172_p7 = pneg %p1171_p3 }
 0x251   : > { %p1178_p1 = por %p1177_p11, %p1176_p6 }
 0x253   : > { %p1179_p2 = pnand %p1178_p1, %p1172_p7 }
 0x255   : > { %1182 = shalt.err (!%p1179_p2)
}
 0x256   : > { %984 = dma.vmem_to_hbm [thread:$0]  (%p1653_p0), %s1563_s20, 128, %s1561_s14, %s767_s12  }
 0x257 PF: > { %s1654_s22 = sld [smem:[#allocation15_spill]]  ;;  %s1655_s26 = sld [smem:[#allocation16_spill]] }
 0x258   : > { %p1657_p5 = scmp.ge.s32.totalorder %s1229_s16, 2 }
 0x25d   : > { %s792_s9 = sand.u32 1, %s1654_s22   ;;  %p1656_p10 = scmp.ne.s32.totalorder %s1655_s26, 0 }
 0x25e   : > { %s793_s17 = scalar_lea.sflag [#allocation4], %s792_s9 }
 0x25f   : > { %p1001_p13 = pnand %p1657_p5, %p1656_p10 }
 0x261   : > { %1212 = dma.done.wait (!%p1001_p13), %s793_s17, 128  }
 0x262   : > { %1214 = vsyncadd (!%p1001_p13), %s793_s17, 4294967168  ;;  %s1658_s13 = smov %s1448_s29  ;;  %p29_p9 = scmp.ge.s32.totalorder %s1448_s29, 4  }
 0x263   : > { %s1659_s29 = smov %s1221_s30  ;;  %s1660_s30 = smov %s1225_s15 }
 0x264   : > { %s1661_s15 = smov %s1458_s18  ;;  %s1662_s16 = smov %s1658_s13 }
 0x265   :  { %31 = sbr.rel (!%p29_p9) target bundleno = 14 (0xe), region = 134 }
 0x26c   :  { %798 = vsyncpa [#allocation3], 1 }
 0x26d   :  { %800 = vsyncpa [#allocation3 + $0x1], 1 }
 0x26e   :  { %801 = vsyncpa [#allocation8], 1 }
 0x26f   :  { %802 = vsyncpa [#allocation4], 1 }
 0x270   :  { %804 = vsyncpa [#allocation4 + $0x1], 1 }
 0x271   :  { %805 = vsyncpa [#allocation5], 1 }
 0x272   :  { %807 = vsyncpa [#allocation5 + $0x1], 1 }

</bundles_post_ra>
